<compile_context>
chip_gen: v7x
topology: tpu7x:2x2x1
jax: 0.10.0
libtpu: 0.0.40
codegen_flags: <defaults>
</compile_context>

<pallas_src>
import math
from functools import partial

import jax
import jax.numpy as jnp
from jax import lax
from jax.experimental import pallas as pl
from jax.experimental.pallas import tpu as pltpu

_NEG_BIG = -1e30  # large negative instead of -inf: avoids inf-inf -> NaN in online softmax


def _round_up(x: int, m: int) -> int:
    return ((x + m - 1) // m) * m


def _pick_group(num_heads: int, head_dim: int, target: int = 256) -> int:
    """Largest divisor G of num_heads with G*head_dim <= target (at least 1)."""
    best = 1
    for g in range(1, num_heads + 1):
        if num_heads % g == 0 and g * head_dim <= target:
            best = g
    return best


def _vmem_limit_bytes() -> int:
    """Generation-aware VMEM limit (~3/4 of physical per-core VMEM)."""
    cap = 128 * 1024 * 1024
    try:
        info = pltpu.get_tpu_info()
        cap = int(getattr(info, "vmem_capacity_bytes", cap)) or cap
    except Exception:
        pass
    return max(32 * 1024 * 1024, min(cap * 3 // 4, 100 * 1024 * 1024))


def _mha_kernel(x_ref, wq_ref, wk_ref, wv_ref, wp_ref, o_ref,
                y_ref, q_s, k_s, v_s,
                *, blk, group_size, head_dim, compute_dtype, approx_recip):
    g = pl.program_id(1)
    num_groups = pl.num_programs(1)
    S = x_ref.shape[1]
    n_q = S // blk

    # ---- QKV projection for this head group (wide-N MXU matmuls; scale folded in wq) ----
    x = x_ref[0].astype(compute_dtype)                               # (S, D), cast in VMEM
    q_s[...] = jnp.dot(x, wq_ref[0],
                       preferred_element_type=jnp.float32).astype(compute_dtype)
    k_s[...] = jnp.dot(x, wk_ref[0],
                       preferred_element_type=jnp.float32).astype(compute_dtype)
    v_s[...] = jnp.dot(x, wv_ref[0],
                       preferred_element_type=jnp.float32).astype(compute_dtype)

    # Causal mask used only on diagonal tiles (hoisted out of the kv loop).
    tri = (lax.broadcasted_iota(jnp.int32, (blk, blk), 0)
           >= lax.broadcasted_iota(jnp.int32, (blk, blk), 1))

    def q_body(qi, carry):
        q_start = pl.multiple_of(qi * blk, blk)
        for gh in range(group_size):                                 # static loop over heads
            col = gh * head_dim
            qb = q_s[pl.ds(q_start, blk), pl.ds(col, head_dim)]      # (blk, hd)

            def kv_body(j, mla):
                m, l, acc = mla
                k_start = pl.multiple_of(j * blk, blk)
                kb = k_s[pl.ds(k_start, blk), pl.ds(col, head_dim)]
                vb = v_s[pl.ds(k_start, blk), pl.ds(col, head_dim)]
                s = lax.dot_general(qb, kb, (((1,), (1,)), ((), ())),
                                    preferred_element_type=jnp.float32)   # (blk, blk)
                m_new = jnp.maximum(m, jnp.max(s, axis=-1, keepdims=True))
                alpha = jnp.exp(m - m_new)
                p = jnp.exp(s - m_new)
                l_new = alpha * l + jnp.sum(p, axis=-1, keepdims=True)
                acc_new = alpha * acc + jnp.dot(p.astype(compute_dtype), vb,
                                                preferred_element_type=jnp.float32)
                return m_new, l_new, acc_new

            m0 = jnp.full((blk, 1), _NEG_BIG, jnp.float32)
            l0 = jnp.zeros((blk, 1), jnp.float32)
            a0 = jnp.zeros((blk, head_dim), jnp.float32)
            # Off-diagonal kv tiles (fully visible): no masking in the hot loop.
            m_f, l_f, acc_f = lax.fori_loop(0, qi, kv_body, (m0, l0, a0))

            # Diagonal tile epilogue: apply the triangular mask once.
            kb = k_s[pl.ds(q_start, blk), pl.ds(col, head_dim)]
            vb = v_s[pl.ds(q_start, blk), pl.ds(col, head_dim)]
            s = lax.dot_general(qb, kb, (((1,), (1,)), ((), ())),
                                preferred_element_type=jnp.float32)
            s = jnp.where(tri, s, _NEG_BIG)
            m_new = jnp.maximum(m_f, jnp.max(s, axis=-1, keepdims=True))
            alpha = jnp.exp(m_f - m_new)
            p = jnp.exp(s - m_new)
            l_new = alpha * l_f + jnp.sum(p, axis=-1, keepdims=True)
            acc_new = alpha * acc_f + jnp.dot(p.astype(compute_dtype), vb,
                                              preferred_element_type=jnp.float32)

            # Deferred softmax normalization (EUP reciprocal on the bf16 path).
            inv_l = pl.reciprocal(l_new, approx=approx_recip)
            yb = (acc_new * inv_l).astype(compute_dtype)             # (blk, hd)
            # Write this head's output into its (static-lane) slice of the group's slab.
            y_ref[g, pl.ds(q_start, blk), pl.ds(col, head_dim)] = yb
        return carry

    lax.fori_loop(0, n_q, q_body, None)

    # Output projection once, at the last group step: sum over groups of matmuls with
    # contraction K = group_size*head_dim, written straight to the HBM output block.
    @pl.when(g == num_groups - 1)
    def _finalize():
        acc = jnp.dot(y_ref[0], wp_ref[0], preferred_element_type=jnp.float32)
        for gi in range(1, y_ref.shape[0]):
            acc = acc + jnp.dot(y_ref[gi], wp_ref[gi], preferred_element_type=jnp.float32)
        o_ref[0] = acc.astype(o_ref.dtype)


def simple_mha_forward(x, w_qkv, w_proj, num_heads, *, compute_dtype=jnp.bfloat16):
    """Forward of SimpleMultiHeadAttention (eval, no RoPE).

    x: (B, S, D); w_qkv: (3D, D); w_proj: (D, D) -- PyTorch nn.Linear layout
    (y = x @ W.T, bias=False).  Output is (B, S, D) in x.dtype.
    """
    B, S, D = x.shape
    assert D % num_heads == 0
    hd = D // num_heads
    scale = 1.0 / math.sqrt(hd)

    # Head grouping: G heads per grid step, lane width gw = G*hd (target <= 256).
    G = _pick_group(num_heads, hd, target=256)
    num_groups = num_heads // G
    gw = G * hd

    # Sequence padding / tiling: kv (lane) tile capped at 128.  Padded query rows are
    # discarded after the call; real rows never attend to padded keys (causal), so exact.
    if S > 128:
        S_pad = _round_up(S, 128)
        blk = 128
    else:
        S_pad = _round_up(S, 8)
        blk = S_pad
    xp = x if S_pad == S else jnp.pad(x, ((0, 0), (0, S_pad - S), (0, 0)))

    # ---- Host-side weight prep: transpose, fold scale into wq, group-major layout ----
    w_qkv_t = jnp.asarray(w_qkv, jnp.float32).T                      # (D, 3D)

    def _grouped(wt):                                                # (D, D) -> (ngrp, D, gw)
        return wt.reshape(D, num_groups, gw).transpose(1, 0, 2)

    wq = _grouped(w_qkv_t[:, 0 * D:1 * D] * scale).astype(compute_dtype)
    wk = _grouped(w_qkv_t[:, 1 * D:2 * D]).astype(compute_dtype)
    wv = _grouped(w_qkv_t[:, 2 * D:3 * D]).astype(compute_dtype)
    # Output projection, group-major rows: out = sum_g y_g @ wp[g]
    wp = jnp.asarray(w_proj, jnp.float32).T.reshape(num_groups, gw, D).astype(compute_dtype)

    kernel = partial(
        _mha_kernel,
        blk=blk,
        group_size=G,
        head_dim=hd,
        compute_dtype=compute_dtype,
        approx_recip=bool(jnp.dtype(compute_dtype) != jnp.dtype(jnp.float32)),
    )

    out = pl.pallas_call(
        kernel,
        out_shape=jax.ShapeDtypeStruct((B, S_pad, D), x.dtype),
        grid_spec=pltpu.PrefetchScalarGridSpec(
            num_scalar_prefetch=0,
            grid=(B, num_groups),                                    # groups = reduction axis
            in_specs=[
                pl.BlockSpec((1, S_pad, D), lambda b, g: (b, 0, 0)),      # x (resident over g)
                pl.BlockSpec((1, D, gw), lambda b, g: (g, 0, 0)),         # wq (group-major)
                pl.BlockSpec((1, D, gw), lambda b, g: (g, 0, 0)),         # wk
                pl.BlockSpec((1, D, gw), lambda b, g: (g, 0, 0)),         # wv
                pl.BlockSpec((num_groups, gw, D), lambda b, g: (0, 0, 0)),  # w_proj.T (resident)
            ],
            out_specs=pl.BlockSpec((1, S_pad, D), lambda b, g: (b, 0, 0)),
            scratch_shapes=[
                pltpu.VMEM((num_groups, S_pad, gw), compute_dtype),  # per-head attention outs
                pltpu.VMEM((S_pad, gw), compute_dtype),              # q (pre-scaled)
                pltpu.VMEM((S_pad, gw), compute_dtype),              # k
                pltpu.VMEM((S_pad, gw), compute_dtype),              # v
            ],
        ),
        compiler_params=pltpu.CompilerParams(
            dimension_semantics=("parallel", "arbitrary"),
            vmem_limit_bytes=_vmem_limit_bytes(),
        ),
    )(xp, wq, wk, wv, wp)

    return out if S_pad == S else out[:, :S, :]


def _reference(x, w_qkv, w_proj, num_heads):
    """Plain-JAX reference matching the PyTorch forward (eval, no RoPE), f32."""
    B, S, D = x.shape
    hd = D // num_heads
    qkv = jnp.einsum("bsd,ed->bse", x, w_qkv)
    q, k, v = jnp.split(qkv, 3, axis=-1)

    def split_heads(t):
        return t.reshape(B, S, num_heads, hd).transpose(0, 2, 1, 3)

    q, k, v = split_heads(q), split_heads(k), split_heads(v)
    scores = jnp.einsum("bhqd,bhkd->bhqk", q, k) / math.sqrt(hd)
    mask = jnp.tril(jnp.ones((S, S), dtype=bool))
    scores = jnp.where(mask[None, None], scores, -jnp.inf)
    attn = jax.nn.softmax(scores, axis=-1)
    y = jnp.einsum("bhqk,bhkd->bhqd", attn, v)
    y = y.transpose(0, 2, 1, 3).reshape(B, S, D)
    return jnp.einsum("bsd,ed->bse", y, w_proj)


if __name__ == "__main__":
    # Small shapes: batch=2, seq=8, dim=32, heads=4 -> head_dim=8
    B, S, D, H = 2, 8, 32, 4

    key = jax.random.PRNGKey(0)
    kx, kq, kp = jax.random.split(key, 3)
    x = jax.random.normal(kx, (B, S, D), dtype=jnp.float32)
    bound = 1.0 / math.sqrt(D)  # nn.Linear default init range
    w_qkv = jax.random.uniform(kq, (3 * D, D), dtype=jnp.float32,
                               minval=-bound, maxval=bound)
    w_proj = jax.random.uniform(kp, (D, D), dtype=jnp.float32,
                                minval=-bound, maxval=bound)

    ref = _reference(x, w_qkv, w_proj, num_heads=H)

    # f32 compute path: tight check against the f32 reference.
    out_f32 = jax.block_until_ready(
        simple_mha_forward(x, w_qkv, w_proj, num_heads=H, compute_dtype=jnp.float32))
    assert out_f32.shape == (B, S, D)
    assert jnp.allclose(out_f32, ref, atol=1e-4, rtol=1e-4), "f32 kernel mismatch"

    # bf16 MXU path (default): looser tolerance vs the f32 reference.
    out_bf16 = jax.block_until_ready(
        simple_mha_forward(x, w_qkv, w_proj, num_heads=H, compute_dtype=jnp.bfloat16))
    assert out_bf16.shape == (B, S, D)
    assert jnp.allclose(out_bf16, ref, atol=5e-2, rtol=5e-2), "bf16 kernel mismatch"

    print("KERNEL_OK")
</pallas_src>

<mosaic_0001>
module attributes {stable_mosaic.version = 11 : i64} {
  func.func @_mha_kernel(%arg0: i32, %arg1: i32, %arg2: memref<1x8x32xf32, #tpu.memory_space<vmem>>, %arg3: memref<1x32x32xf32, #tpu.memory_space<vmem>>, %arg4: memref<1x32x32xf32, #tpu.memory_space<vmem>>, %arg5: memref<1x32x32xf32, #tpu.memory_space<vmem>>, %arg6: memref<1x32x32xf32, #tpu.memory_space<vmem>>, %arg7: memref<1x8x32xf32, #tpu.memory_space<vmem>>, %arg8: memref<1x8x32xf32, #tpu.memory_space<vmem>>, %arg9: memref<8x32xf32, #tpu.memory_space<vmem>>, %arg10: memref<8x32xf32, #tpu.memory_space<vmem>>, %arg11: memref<8x32xf32, #tpu.memory_space<vmem>>) attributes {dimension_semantics = [#tpu.dimension_semantics<parallel>, #tpu.dimension_semantics<arbitrary>], iteration_bounds = array<i64: 2, 1>, scalar_prefetch = 0 : i64, scratch_operands = 4 : i64, tpu.core_type = #tpu.core_type<tc>, window_params = [{transform_indices = @transform_0, window_bounds = array<i64: 1, 8, 32>}, {transform_indices = @transform_1, window_bounds = array<i64: 1, 32, 32>}, {transform_indices = @transform_2, window_bounds = array<i64: 1, 32, 32>}, {transform_indices = @transform_3, window_bounds = array<i64: 1, 32, 32>}, {pipeline_mode = #tpu.pipeline_mode<synchronous>, transform_indices = @transform_4, window_bounds = array<i64: 1, 32, 32>}, {transform_indices = @transform_5, window_bounds = array<i64: 1, 8, 32>}]} {
    %c0 = arith.constant 0 : index
    %c0_0 = arith.constant 0 : index
    %c0_1 = arith.constant 0 : index
    %0 = vector.load %arg2[%c0, %c0_0, %c0_1] : memref<1x8x32xf32, #tpu.memory_space<vmem>>, vector<1x8x32xf32>
    %1 = vector.shape_cast %0 : vector<1x8x32xf32> to vector<8x32xf32>
    %c0_2 = arith.constant 0 : index
    %c0_3 = arith.constant 0 : index
    %c0_4 = arith.constant 0 : index
    %2 = vector.load %arg3[%c0_2, %c0_3, %c0_4] : memref<1x32x32xf32, #tpu.memory_space<vmem>>, vector<1x32x32xf32>
    %3 = vector.shape_cast %2 : vector<1x32x32xf32> to vector<32x32xf32>
    %cst = arith.constant dense<0.000000e+00> : vector<8x32xf32>
    %4 = tpu.matmul %1, %3, %cst {dimension_numbers = #tpu.dot_dimension_numbers<[1], [0], [0], [1], [0, 0, 1, 1], [], []>} : vector<8x32xf32>, vector<32x32xf32>, vector<8x32xf32> -> vector<8x32xf32>
    %c0_5 = arith.constant 0 : index
    %c0_6 = arith.constant 0 : index
    %5 = vector.load %arg9[%c0_5, %c0_6] : memref<8x32xf32, #tpu.memory_space<vmem>>, vector<8x32xf32>
    tpu.vector_store %arg9[%c0_5, %c0_6], %4 {strides = array<i32>} : memref<8x32xf32, #tpu.memory_space<vmem>>, vector<8x32xf32>,
    %c0_7 = arith.constant 0 : index
    %c0_8 = arith.constant 0 : index
    %c0_9 = arith.constant 0 : index
    %6 = vector.load %arg4[%c0_7, %c0_8, %c0_9] : memref<1x32x32xf32, #tpu.memory_space<vmem>>, vector<1x32x32xf32>
    %7 = vector.shape_cast %6 : vector<1x32x32xf32> to vector<32x32xf32>
    %cst_10 = arith.constant dense<0.000000e+00> : vector<8x32xf32>
    %8 = tpu.matmul %1, %7, %cst_10 {dimension_numbers = #tpu.dot_dimension_numbers<[1], [0], [0], [1], [0, 0, 1, 1], [], []>} : vector<8x32xf32>, vector<32x32xf32>, vector<8x32xf32> -> vector<8x32xf32>
    %c0_11 = arith.constant 0 : index
    %c0_12 = arith.constant 0 : index
    %9 = vector.load %arg10[%c0_11, %c0_12] : memref<8x32xf32, #tpu.memory_space<vmem>>, vector<8x32xf32>
    tpu.vector_store %arg10[%c0_11, %c0_12], %8 {strides = array<i32>} : memref<8x32xf32, #tpu.memory_space<vmem>>, vector<8x32xf32>,
    %c0_13 = arith.constant 0 : index
    %c0_14 = arith.constant 0 : index
    %c0_15 = arith.constant 0 : index
    %10 = vector.load %arg5[%c0_13, %c0_14, %c0_15] : memref<1x32x32xf32, #tpu.memory_space<vmem>>, vector<1x32x32xf32>
    %11 = vector.shape_cast %10 : vector<1x32x32xf32> to vector<32x32xf32>
    %cst_16 = arith.constant dense<0.000000e+00> : vector<8x32xf32>
    %12 = tpu.matmul %1, %11, %cst_16 {dimension_numbers = #tpu.dot_dimension_numbers<[1], [0], [0], [1], [0, 0, 1, 1], [], []>} : vector<8x32xf32>, vector<32x32xf32>, vector<8x32xf32> -> vector<8x32xf32>
    %c0_17 = arith.constant 0 : index
    %c0_18 = arith.constant 0 : index
    %13 = vector.load %arg11[%c0_17, %c0_18] : memref<8x32xf32, #tpu.memory_space<vmem>>, vector<8x32xf32>
    tpu.vector_store %arg11[%c0_17, %c0_18], %12 {strides = array<i32>} : memref<8x32xf32, #tpu.memory_space<vmem>>, vector<8x32xf32>,
    %14 = tpu.iota {dimensions = array<i32: 0>} : vector<8x8xi32>
    %15 = tpu.iota {dimensions = array<i32: 1>} : vector<8x8xi32>
    %16 = arith.cmpi sge, %14, %15 : vector<8x8xi32>
    %c0_i32 = arith.constant 0 : i32
    %c8_i32 = arith.constant 8 : i32
    %17 = arith.muli %c0_i32, %c8_i32 : i32
    %18 = tpu.assume_multiple %17, 8 : i32
    %19 = arith.index_cast %18 : i32 to index
    %c0_19 = arith.constant 0 : index
    %20 = vector.load %arg9[%19, %c0_19] : memref<8x32xf32, #tpu.memory_space<vmem>>, vector<8x8xf32>
    %cst_20 = arith.constant -1.000000e+30 : f32
    %21 = vector.broadcast %cst_20 : f32 to vector<8x1xf32>
    %cst_21 = arith.constant 0.000000e+00 : f32
    %22 = vector.broadcast %cst_21 : f32 to vector<8x1xf32>
    %cst_22 = arith.constant 0.000000e+00 : f32
    %23 = vector.broadcast %cst_22 : f32 to vector<8x8xf32>
    %c0_i32_23 = arith.constant 0 : i32
    %24 = arith.subi %c0_i32, %c0_i32_23 : i32
    %25 = arith.addi %c0_i32_23, %24 : i32
    %c1_i32 = arith.constant 1 : i32
    %26:3 = scf.for %arg12 = %c0_i32_23 to %25 step %c1_i32 iter_args(%arg13 = %21, %arg14 = %22, %arg15 = %23) -> (vector<8x1xf32>, vector<8x1xf32>, vector<8x8xf32>)  : i32 {
      %c8_i32_74 = arith.constant 8 : i32
      %178 = arith.muli %arg12, %c8_i32_74 : i32
      %179 = tpu.assume_multiple %178, 8 : i32
      %180 = arith.index_cast %179 : i32 to index
      %c0_75 = arith.constant 0 : index
      %181 = vector.load %arg10[%180, %c0_75] : memref<8x32xf32, #tpu.memory_space<vmem>>, vector<8x8xf32>
      %182 = arith.index_cast %179 : i32 to index
      %c0_76 = arith.constant 0 : index
      %183 = vector.load %arg11[%182, %c0_76] : memref<8x32xf32, #tpu.memory_space<vmem>>, vector<8x8xf32>
      %cst_77 = arith.constant dense<0.000000e+00> : vector<8x8xf32>
      %184 = tpu.matmul %20, %181, %cst_77 {dimension_numbers = #tpu.dot_dimension_numbers<[1], [1], [0], [0], [0, 0, 1, 0], [], []>} : vector<8x8xf32>, vector<8x8xf32>, vector<8x8xf32> -> vector<8x8xf32>
      %cst_78 = arith.constant dense<0xFF800000> : vector<8xf32>
      %185 = vector.multi_reduction <maximumf>, %184, %cst_78 [1] : vector<8x8xf32> to vector<8xf32>
      %186 = vector.shape_cast %185 : vector<8xf32> to vector<8x1xf32>
      %187 = arith.maximumf %arg13, %186 : vector<8x1xf32>
      %188 = arith.subf %arg13, %187 : vector<8x1xf32>
      %189 = math.exp %188 : vector<8x1xf32>
      %190 = vector.broadcast %187 : vector<8x1xf32> to vector<8x8xf32>
      %191 = arith.subf %184, %190 : vector<8x8xf32>
      %192 = math.exp %191 : vector<8x8xf32>
      %193 = arith.mulf %189, %arg14 : vector<8x1xf32>
      %cst_79 = arith.constant dense<0.000000e+00> : vector<8xf32>
      %194 = vector.multi_reduction <add>, %192, %cst_79 [1] : vector<8x8xf32> to vector<8xf32>
      %195 = vector.shape_cast %194 : vector<8xf32> to vector<8x1xf32>
      %196 = arith.addf %193, %195 : vector<8x1xf32>
      %197 = vector.broadcast %189 : vector<8x1xf32> to vector<8x8xf32>
      %198 = arith.mulf %197, %arg15 : vector<8x8xf32>
      %cst_80 = arith.constant dense<0.000000e+00> : vector<8x8xf32>
      %199 = tpu.matmul %192, %183, %cst_80 {dimension_numbers = #tpu.dot_dimension_numbers<[1], [0], [0], [1], [0, 0, 1, 1], [], []>} : vector<8x8xf32>, vector<8x8xf32>, vector<8x8xf32> -> vector<8x8xf32>
      %200 = arith.addf %198, %199 : vector<8x8xf32>
      scf.yield %187, %196, %200 : vector<8x1xf32>, vector<8x1xf32>, vector<8x8xf32>
    }
    %27 = arith.index_cast %18 : i32 to index
    %c0_24 = arith.constant 0 : index
    %28 = vector.load %arg10[%27, %c0_24] : memref<8x32xf32, #tpu.memory_space<vmem>>, vector<8x8xf32>
    %29 = arith.index_cast %18 : i32 to index
    %c0_25 = arith.constant 0 : index
    %30 = vector.load %arg11[%29, %c0_25] : memref<8x32xf32, #tpu.memory_space<vmem>>, vector<8x8xf32>
    %cst_26 = arith.constant dense<0.000000e+00> : vector<8x8xf32>
    %31 = tpu.matmul %20, %28, %cst_26 {dimension_numbers = #tpu.dot_dimension_numbers<[1], [1], [0], [0], [0, 0, 1, 0], [], []>} : vector<8x8xf32>, vector<8x8xf32>, vector<8x8xf32> -> vector<8x8xf32>
    %cst_27 = arith.constant -1.000000e+30 : f32
    %32 = vector.broadcast %cst_27 : f32 to vector<8x8xf32>
    %33 = arith.select %16, %31, %32 : vector<8x8xi1>, vector<8x8xf32>
    %cst_28 = arith.constant dense<0xFF800000> : vector<8xf32>
    %34 = vector.multi_reduction <maximumf>, %33, %cst_28 [1] : vector<8x8xf32> to vector<8xf32>
    %35 = vector.shape_cast %34 : vector<8xf32> to vector<8x1xf32>
    %36 = arith.maximumf %26#0, %35 : vector<8x1xf32>
    %37 = arith.subf %26#0, %36 : vector<8x1xf32>
    %38 = math.exp %37 : vector<8x1xf32>
    %39 = vector.broadcast %36 : vector<8x1xf32> to vector<8x8xf32>
    %40 = arith.subf %33, %39 : vector<8x8xf32>
    %41 = math.exp %40 : vector<8x8xf32>
    %42 = arith.mulf %38, %26#1 : vector<8x1xf32>
    %cst_29 = arith.constant dense<0.000000e+00> : vector<8xf32>
    %43 = vector.multi_reduction <add>, %41, %cst_29 [1] : vector<8x8xf32> to vector<8xf32>
    %44 = vector.shape_cast %43 : vector<8xf32> to vector<8x1xf32>
    %45 = arith.addf %42, %44 : vector<8x1xf32>
    %46 = vector.broadcast %38 : vector<8x1xf32> to vector<8x8xf32>
    %47 = arith.mulf %46, %26#2 : vector<8x8xf32>
    %cst_30 = arith.constant dense<0.000000e+00> : vector<8x8xf32>
    %48 = tpu.matmul %41, %30, %cst_30 {dimension_numbers = #tpu.dot_dimension_numbers<[1], [0], [0], [1], [0, 0, 1, 1], [], []>} : vector<8x8xf32>, vector<8x8xf32>, vector<8x8xf32> -> vector<8x8xf32>
    %49 = arith.addf %47, %48 : vector<8x8xf32>
    %50 = tpu.reciprocal %45 : vector<8x1xf32> -> vector<8x1xf32>
    %51 = vector.broadcast %50 : vector<8x1xf32> to vector<8x8xf32>
    %52 = arith.mulf %49, %51 : vector<8x8xf32>
    %53 = arith.index_cast %arg1 : i32 to index
    %54 = arith.index_cast %18 : i32 to index
    %c0_31 = arith.constant 0 : index
    %55 = vector.load %arg8[%53, %54, %c0_31] : memref<1x8x32xf32, #tpu.memory_space<vmem>>, vector<1x8x8xf32>
    %56 = vector.shape_cast %55 : vector<1x8x8xf32> to vector<8x8xf32>
    %57 = vector.shape_cast %52 : vector<8x8xf32> to vector<1x8x8xf32>
    tpu.vector_store %arg8[%53, %54, %c0_31], %57 {strides = array<i32>} : memref<1x8x32xf32, #tpu.memory_space<vmem>>, vector<1x8x8xf32>,
    %58 = arith.index_cast %18 : i32 to index
    %c8 = arith.constant 8 : index
    %59 = vector.load %arg9[%58, %c8] : memref<8x32xf32, #tpu.memory_space<vmem>>, vector<8x8xf32>
    %cst_32 = arith.constant -1.000000e+30 : f32
    %60 = vector.broadcast %cst_32 : f32 to vector<8x1xf32>
    %cst_33 = arith.constant 0.000000e+00 : f32
    %61 = vector.broadcast %cst_33 : f32 to vector<8x1xf32>
    %cst_34 = arith.constant 0.000000e+00 : f32
    %62 = vector.broadcast %cst_34 : f32 to vector<8x8xf32>
    %c0_i32_35 = arith.constant 0 : i32
    %63 = arith.subi %c0_i32, %c0_i32_35 : i32
    %64 = arith.addi %c0_i32_35, %63 : i32
    %c1_i32_36 = arith.constant 1 : i32
    %65:3 = scf.for %arg12 = %c0_i32_35 to %64 step %c1_i32_36 iter_args(%arg13 = %60, %arg14 = %61, %arg15 = %62) -> (vector<8x1xf32>, vector<8x1xf32>, vector<8x8xf32>)  : i32 {
      %c8_i32_74 = arith.constant 8 : i32
      %178 = arith.muli %arg12, %c8_i32_74 : i32
      %179 = tpu.assume_multiple %178, 8 : i32
      %180 = arith.index_cast %179 : i32 to index
      %c8_75 = arith.constant 8 : index
      %181 = vector.load %arg10[%180, %c8_75] : memref<8x32xf32, #tpu.memory_space<vmem>>, vector<8x8xf32>
      %182 = arith.index_cast %179 : i32 to index
      %c8_76 = arith.constant 8 : index
      %183 = vector.load %arg11[%182, %c8_76] : memref<8x32xf32, #tpu.memory_space<vmem>>, vector<8x8xf32>
      %cst_77 = arith.constant dense<0.000000e+00> : vector<8x8xf32>
      %184 = tpu.matmul %59, %181, %cst_77 {dimension_numbers = #tpu.dot_dimension_numbers<[1], [1], [0], [0], [0, 0, 1, 0], [], []>} : vector<8x8xf32>, vector<8x8xf32>, vector<8x8xf32> -> vector<8x8xf32>
      %cst_78 = arith.constant dense<0xFF800000> : vector<8xf32>
      %185 = vector.multi_reduction <maximumf>, %184, %cst_78 [1] : vector<8x8xf32> to vector<8xf32>
      %186 = vector.shape_cast %185 : vector<8xf32> to vector<8x1xf32>
      %187 = arith.maximumf %arg13, %186 : vector<8x1xf32>
      %188 = arith.subf %arg13, %187 : vector<8x1xf32>
      %189 = math.exp %188 : vector<8x1xf32>
      %190 = vector.broadcast %187 : vector<8x1xf32> to vector<8x8xf32>
      %191 = arith.subf %184, %190 : vector<8x8xf32>
      %192 = math.exp %191 : vector<8x8xf32>
      %193 = arith.mulf %189, %arg14 : vector<8x1xf32>
      %cst_79 = arith.constant dense<0.000000e+00> : vector<8xf32>
      %194 = vector.multi_reduction <add>, %192, %cst_79 [1] : vector<8x8xf32> to vector<8xf32>
      %195 = vector.shape_cast %194 : vector<8xf32> to vector<8x1xf32>
      %196 = arith.addf %193, %195 : vector<8x1xf32>
      %197 = vector.broadcast %189 : vector<8x1xf32> to vector<8x8xf32>
      %198 = arith.mulf %197, %arg15 : vector<8x8xf32>
      %cst_80 = arith.constant dense<0.000000e+00> : vector<8x8xf32>
      %199 = tpu.matmul %192, %183, %cst_80 {dimension_numbers = #tpu.dot_dimension_numbers<[1], [0], [0], [1], [0, 0, 1, 1], [], []>} : vector<8x8xf32>, vector<8x8xf32>, vector<8x8xf32> -> vector<8x8xf32>
      %200 = arith.addf %198, %199 : vector<8x8xf32>
      scf.yield %187, %196, %200 : vector<8x1xf32>, vector<8x1xf32>, vector<8x8xf32>
    }
    %66 = arith.index_cast %18 : i32 to index
    %c8_37 = arith.constant 8 : index
    %67 = vector.load %arg10[%66, %c8_37] : memref<8x32xf32, #tpu.memory_space<vmem>>, vector<8x8xf32>
    %68 = arith.index_cast %18 : i32 to index
    %c8_38 = arith.constant 8 : index
    %69 = vector.load %arg11[%68, %c8_38] : memref<8x32xf32, #tpu.memory_space<vmem>>, vector<8x8xf32>
    %cst_39 = arith.constant dense<0.000000e+00> : vector<8x8xf32>
    %70 = tpu.matmul %59, %67, %cst_39 {dimension_numbers = #tpu.dot_dimension_numbers<[1], [1], [0], [0], [0, 0, 1, 0], [], []>} : vector<8x8xf32>, vector<8x8xf32>, vector<8x8xf32> -> vector<8x8xf32>
    %cst_40 = arith.constant -1.000000e+30 : f32
    %71 = vector.broadcast %cst_40 : f32 to vector<8x8xf32>
    %72 = arith.select %16, %70, %71 : vector<8x8xi1>, vector<8x8xf32>
    %cst_41 = arith.constant dense<0xFF800000> : vector<8xf32>
    %73 = vector.multi_reduction <maximumf>, %72, %cst_41 [1] : vector<8x8xf32> to vector<8xf32>
    %74 = vector.shape_cast %73 : vector<8xf32> to vector<8x1xf32>
    %75 = arith.maximumf %65#0, %74 : vector<8x1xf32>
    %76 = arith.subf %65#0, %75 : vector<8x1xf32>
    %77 = math.exp %76 : vector<8x1xf32>
    %78 = vector.broadcast %75 : vector<8x1xf32> to vector<8x8xf32>
    %79 = arith.subf %72, %78 : vector<8x8xf32>
    %80 = math.exp %79 : vector<8x8xf32>
    %81 = arith.mulf %77, %65#1 : vector<8x1xf32>
    %cst_42 = arith.constant dense<0.000000e+00> : vector<8xf32>
    %82 = vector.multi_reduction <add>, %80, %cst_42 [1] : vector<8x8xf32> to vector<8xf32>
    %83 = vector.shape_cast %82 : vector<8xf32> to vector<8x1xf32>
    %84 = arith.addf %81, %83 : vector<8x1xf32>
    %85 = vector.broadcast %77 : vector<8x1xf32> to vector<8x8xf32>
    %86 = arith.mulf %85, %65#2 : vector<8x8xf32>
    %cst_43 = arith.constant dense<0.000000e+00> : vector<8x8xf32>
    %87 = tpu.matmul %80, %69, %cst_43 {dimension_numbers = #tpu.dot_dimension_numbers<[1], [0], [0], [1], [0, 0, 1, 1], [], []>} : vector<8x8xf32>, vector<8x8xf32>, vector<8x8xf32> -> vector<8x8xf32>
    %88 = arith.addf %86, %87 : vector<8x8xf32>
    %89 = tpu.reciprocal %84 : vector<8x1xf32> -> vector<8x1xf32>
    %90 = vector.broadcast %89 : vector<8x1xf32> to vector<8x8xf32>
    %91 = arith.mulf %88, %90 : vector<8x8xf32>
    %92 = arith.index_cast %arg1 : i32 to index
    %93 = arith.index_cast %18 : i32 to index
    %c8_44 = arith.constant 8 : index
    %94 = vector.load %arg8[%92, %93, %c8_44] : memref<1x8x32xf32, #tpu.memory_space<vmem>>, vector<1x8x8xf32>
    %95 = vector.shape_cast %94 : vector<1x8x8xf32> to vector<8x8xf32>
    %96 = vector.shape_cast %91 : vector<8x8xf32> to vector<1x8x8xf32>
    tpu.vector_store %arg8[%92, %93, %c8_44], %96 {strides = array<i32>} : memref<1x8x32xf32, #tpu.memory_space<vmem>>, vector<1x8x8xf32>,
    %97 = arith.index_cast %18 : i32 to index
    %c16 = arith.constant 16 : index
    %98 = vector.load %arg9[%97, %c16] : memref<8x32xf32, #tpu.memory_space<vmem>>, vector<8x8xf32>
    %cst_45 = arith.constant -1.000000e+30 : f32
    %99 = vector.broadcast %cst_45 : f32 to vector<8x1xf32>
    %cst_46 = arith.constant 0.000000e+00 : f32
    %100 = vector.broadcast %cst_46 : f32 to vector<8x1xf32>
    %cst_47 = arith.constant 0.000000e+00 : f32
    %101 = vector.broadcast %cst_47 : f32 to vector<8x8xf32>
    %c0_i32_48 = arith.constant 0 : i32
    %102 = arith.subi %c0_i32, %c0_i32_48 : i32
    %103 = arith.addi %c0_i32_48, %102 : i32
    %c1_i32_49 = arith.constant 1 : i32
    %104:3 = scf.for %arg12 = %c0_i32_48 to %103 step %c1_i32_49 iter_args(%arg13 = %99, %arg14 = %100, %arg15 = %101) -> (vector<8x1xf32>, vector<8x1xf32>, vector<8x8xf32>)  : i32 {
      %c8_i32_74 = arith.constant 8 : i32
      %178 = arith.muli %arg12, %c8_i32_74 : i32
      %179 = tpu.assume_multiple %178, 8 : i32
      %180 = arith.index_cast %179 : i32 to index
      %c16_75 = arith.constant 16 : index
      %181 = vector.load %arg10[%180, %c16_75] : memref<8x32xf32, #tpu.memory_space<vmem>>, vector<8x8xf32>
      %182 = arith.index_cast %179 : i32 to index
      %c16_76 = arith.constant 16 : index
      %183 = vector.load %arg11[%182, %c16_76] : memref<8x32xf32, #tpu.memory_space<vmem>>, vector<8x8xf32>
      %cst_77 = arith.constant dense<0.000000e+00> : vector<8x8xf32>
      %184 = tpu.matmul %98, %181, %cst_77 {dimension_numbers = #tpu.dot_dimension_numbers<[1], [1], [0], [0], [0, 0, 1, 0], [], []>} : vector<8x8xf32>, vector<8x8xf32>, vector<8x8xf32> -> vector<8x8xf32>
      %cst_78 = arith.constant dense<0xFF800000> : vector<8xf32>
      %185 = vector.multi_reduction <maximumf>, %184, %cst_78 [1] : vector<8x8xf32> to vector<8xf32>
      %186 = vector.shape_cast %185 : vector<8xf32> to vector<8x1xf32>
      %187 = arith.maximumf %arg13, %186 : vector<8x1xf32>
      %188 = arith.subf %arg13, %187 : vector<8x1xf32>
      %189 = math.exp %188 : vector<8x1xf32>
      %190 = vector.broadcast %187 : vector<8x1xf32> to vector<8x8xf32>
      %191 = arith.subf %184, %190 : vector<8x8xf32>
      %192 = math.exp %191 : vector<8x8xf32>
      %193 = arith.mulf %189, %arg14 : vector<8x1xf32>
      %cst_79 = arith.constant dense<0.000000e+00> : vector<8xf32>
      %194 = vector.multi_reduction <add>, %192, %cst_79 [1] : vector<8x8xf32> to vector<8xf32>
      %195 = vector.shape_cast %194 : vector<8xf32> to vector<8x1xf32>
      %196 = arith.addf %193, %195 : vector<8x1xf32>
      %197 = vector.broadcast %189 : vector<8x1xf32> to vector<8x8xf32>
      %198 = arith.mulf %197, %arg15 : vector<8x8xf32>
      %cst_80 = arith.constant dense<0.000000e+00> : vector<8x8xf32>
      %199 = tpu.matmul %192, %183, %cst_80 {dimension_numbers = #tpu.dot_dimension_numbers<[1], [0], [0], [1], [0, 0, 1, 1], [], []>} : vector<8x8xf32>, vector<8x8xf32>, vector<8x8xf32> -> vector<8x8xf32>
      %200 = arith.addf %198, %199 : vector<8x8xf32>
      scf.yield %187, %196, %200 : vector<8x1xf32>, vector<8x1xf32>, vector<8x8xf32>
    }
    %105 = arith.index_cast %18 : i32 to index
    %c16_50 = arith.constant 16 : index
    %106 = vector.load %arg10[%105, %c16_50] : memref<8x32xf32, #tpu.memory_space<vmem>>, vector<8x8xf32>
    %107 = arith.index_cast %18 : i32 to index
    %c16_51 = arith.constant 16 : index
    %108 = vector.load %arg11[%107, %c16_51] : memref<8x32xf32, #tpu.memory_space<vmem>>, vector<8x8xf32>
    %cst_52 = arith.constant dense<0.000000e+00> : vector<8x8xf32>
    %109 = tpu.matmul %98, %106, %cst_52 {dimension_numbers = #tpu.dot_dimension_numbers<[1], [1], [0], [0], [0, 0, 1, 0], [], []>} : vector<8x8xf32>, vector<8x8xf32>, vector<8x8xf32> -> vector<8x8xf32>
    %cst_53 = arith.constant -1.000000e+30 : f32
    %110 = vector.broadcast %cst_53 : f32 to vector<8x8xf32>
    %111 = arith.select %16, %109, %110 : vector<8x8xi1>, vector<8x8xf32>
    %cst_54 = arith.constant dense<0xFF800000> : vector<8xf32>
    %112 = vector.multi_reduction <maximumf>, %111, %cst_54 [1] : vector<8x8xf32> to vector<8xf32>
    %113 = vector.shape_cast %112 : vector<8xf32> to vector<8x1xf32>
    %114 = arith.maximumf %104#0, %113 : vector<8x1xf32>
    %115 = arith.subf %104#0, %114 : vector<8x1xf32>
    %116 = math.exp %115 : vector<8x1xf32>
    %117 = vector.broadcast %114 : vector<8x1xf32> to vector<8x8xf32>
    %118 = arith.subf %111, %117 : vector<8x8xf32>
    %119 = math.exp %118 : vector<8x8xf32>
    %120 = arith.mulf %116, %104#1 : vector<8x1xf32>
    %cst_55 = arith.constant dense<0.000000e+00> : vector<8xf32>
    %121 = vector.multi_reduction <add>, %119, %cst_55 [1] : vector<8x8xf32> to vector<8xf32>
    %122 = vector.shape_cast %121 : vector<8xf32> to vector<8x1xf32>
    %123 = arith.addf %120, %122 : vector<8x1xf32>
    %124 = vector.broadcast %116 : vector<8x1xf32> to vector<8x8xf32>
    %125 = arith.mulf %124, %104#2 : vector<8x8xf32>
    %cst_56 = arith.constant dense<0.000000e+00> : vector<8x8xf32>
    %126 = tpu.matmul %119, %108, %cst_56 {dimension_numbers = #tpu.dot_dimension_numbers<[1], [0], [0], [1], [0, 0, 1, 1], [], []>} : vector<8x8xf32>, vector<8x8xf32>, vector<8x8xf32> -> vector<8x8xf32>
    %127 = arith.addf %125, %126 : vector<8x8xf32>
    %128 = tpu.reciprocal %123 : vector<8x1xf32> -> vector<8x1xf32>
    %129 = vector.broadcast %128 : vector<8x1xf32> to vector<8x8xf32>
    %130 = arith.mulf %127, %129 : vector<8x8xf32>
    %131 = arith.index_cast %arg1 : i32 to index
    %132 = arith.index_cast %18 : i32 to index
    %c16_57 = arith.constant 16 : index
    %133 = vector.load %arg8[%131, %132, %c16_57] : memref<1x8x32xf32, #tpu.memory_space<vmem>>, vector<1x8x8xf32>
    %134 = vector.shape_cast %133 : vector<1x8x8xf32> to vector<8x8xf32>
    %135 = vector.shape_cast %130 : vector<8x8xf32> to vector<1x8x8xf32>
    tpu.vector_store %arg8[%131, %132, %c16_57], %135 {strides = array<i32>} : memref<1x8x32xf32, #tpu.memory_space<vmem>>, vector<1x8x8xf32>,
    %136 = arith.index_cast %18 : i32 to index
    %c24 = arith.constant 24 : index
    %137 = vector.load %arg9[%136, %c24] : memref<8x32xf32, #tpu.memory_space<vmem>>, vector<8x8xf32>
    %cst_58 = arith.constant -1.000000e+30 : f32
    %138 = vector.broadcast %cst_58 : f32 to vector<8x1xf32>
    %cst_59 = arith.constant 0.000000e+00 : f32
    %139 = vector.broadcast %cst_59 : f32 to vector<8x1xf32>
    %cst_60 = arith.constant 0.000000e+00 : f32
    %140 = vector.broadcast %cst_60 : f32 to vector<8x8xf32>
    %c0_i32_61 = arith.constant 0 : i32
    %141 = arith.subi %c0_i32, %c0_i32_61 : i32
    %142 = arith.addi %c0_i32_61, %141 : i32
    %c1_i32_62 = arith.constant 1 : i32
    %143:3 = scf.for %arg12 = %c0_i32_61 to %142 step %c1_i32_62 iter_args(%arg13 = %138, %arg14 = %139, %arg15 = %140) -> (vector<8x1xf32>, vector<8x1xf32>, vector<8x8xf32>)  : i32 {
      %c8_i32_74 = arith.constant 8 : i32
      %178 = arith.muli %arg12, %c8_i32_74 : i32
      %179 = tpu.assume_multiple %178, 8 : i32
      %180 = arith.index_cast %179 : i32 to index
      %c24_75 = arith.constant 24 : index
      %181 = vector.load %arg10[%180, %c24_75] : memref<8x32xf32, #tpu.memory_space<vmem>>, vector<8x8xf32>
      %182 = arith.index_cast %179 : i32 to index
      %c24_76 = arith.constant 24 : index
      %183 = vector.load %arg11[%182, %c24_76] : memref<8x32xf32, #tpu.memory_space<vmem>>, vector<8x8xf32>
      %cst_77 = arith.constant dense<0.000000e+00> : vector<8x8xf32>
      %184 = tpu.matmul %137, %181, %cst_77 {dimension_numbers = #tpu.dot_dimension_numbers<[1], [1], [0], [0], [0, 0, 1, 0], [], []>} : vector<8x8xf32>, vector<8x8xf32>, vector<8x8xf32> -> vector<8x8xf32>
      %cst_78 = arith.constant dense<0xFF800000> : vector<8xf32>
      %185 = vector.multi_reduction <maximumf>, %184, %cst_78 [1] : vector<8x8xf32> to vector<8xf32>
      %186 = vector.shape_cast %185 : vector<8xf32> to vector<8x1xf32>
      %187 = arith.maximumf %arg13, %186 : vector<8x1xf32>
      %188 = arith.subf %arg13, %187 : vector<8x1xf32>
      %189 = math.exp %188 : vector<8x1xf32>
      %190 = vector.broadcast %187 : vector<8x1xf32> to vector<8x8xf32>
      %191 = arith.subf %184, %190 : vector<8x8xf32>
      %192 = math.exp %191 : vector<8x8xf32>
      %193 = arith.mulf %189, %arg14 : vector<8x1xf32>
      %cst_79 = arith.constant dense<0.000000e+00> : vector<8xf32>
      %194 = vector.multi_reduction <add>, %192, %cst_79 [1] : vector<8x8xf32> to vector<8xf32>
      %195 = vector.shape_cast %194 : vector<8xf32> to vector<8x1xf32>
      %196 = arith.addf %193, %195 : vector<8x1xf32>
      %197 = vector.broadcast %189 : vector<8x1xf32> to vector<8x8xf32>
      %198 = arith.mulf %197, %arg15 : vector<8x8xf32>
      %cst_80 = arith.constant dense<0.000000e+00> : vector<8x8xf32>
      %199 = tpu.matmul %192, %183, %cst_80 {dimension_numbers = #tpu.dot_dimension_numbers<[1], [0], [0], [1], [0, 0, 1, 1], [], []>} : vector<8x8xf32>, vector<8x8xf32>, vector<8x8xf32> -> vector<8x8xf32>
      %200 = arith.addf %198, %199 : vector<8x8xf32>
      scf.yield %187, %196, %200 : vector<8x1xf32>, vector<8x1xf32>, vector<8x8xf32>
    }
    %144 = arith.index_cast %18 : i32 to index
    %c24_63 = arith.constant 24 : index
    %145 = vector.load %arg10[%144, %c24_63] : memref<8x32xf32, #tpu.memory_space<vmem>>, vector<8x8xf32>
    %146 = arith.index_cast %18 : i32 to index
    %c24_64 = arith.constant 24 : index
    %147 = vector.load %arg11[%146, %c24_64] : memref<8x32xf32, #tpu.memory_space<vmem>>, vector<8x8xf32>
    %cst_65 = arith.constant dense<0.000000e+00> : vector<8x8xf32>
    %148 = tpu.matmul %137, %145, %cst_65 {dimension_numbers = #tpu.dot_dimension_numbers<[1], [1], [0], [0], [0, 0, 1, 0], [], []>} : vector<8x8xf32>, vector<8x8xf32>, vector<8x8xf32> -> vector<8x8xf32>
    %cst_66 = arith.constant -1.000000e+30 : f32
    %149 = vector.broadcast %cst_66 : f32 to vector<8x8xf32>
    %150 = arith.select %16, %148, %149 : vector<8x8xi1>, vector<8x8xf32>
    %cst_67 = arith.constant dense<0xFF800000> : vector<8xf32>
    %151 = vector.multi_reduction <maximumf>, %150, %cst_67 [1] : vector<8x8xf32> to vector<8xf32>
    %152 = vector.shape_cast %151 : vector<8xf32> to vector<8x1xf32>
    %153 = arith.maximumf %143#0, %152 : vector<8x1xf32>
    %154 = arith.subf %143#0, %153 : vector<8x1xf32>
    %155 = math.exp %154 : vector<8x1xf32>
    %156 = vector.broadcast %153 : vector<8x1xf32> to vector<8x8xf32>
    %157 = arith.subf %150, %156 : vector<8x8xf32>
    %158 = math.exp %157 : vector<8x8xf32>
    %159 = arith.mulf %155, %143#1 : vector<8x1xf32>
    %cst_68 = arith.constant dense<0.000000e+00> : vector<8xf32>
    %160 = vector.multi_reduction <add>, %158, %cst_68 [1] : vector<8x8xf32> to vector<8xf32>
    %161 = vector.shape_cast %160 : vector<8xf32> to vector<8x1xf32>
    %162 = arith.addf %159, %161 : vector<8x1xf32>
    %163 = vector.broadcast %155 : vector<8x1xf32> to vector<8x8xf32>
    %164 = arith.mulf %163, %143#2 : vector<8x8xf32>
    %cst_69 = arith.constant dense<0.000000e+00> : vector<8x8xf32>
    %165 = tpu.matmul %158, %147, %cst_69 {dimension_numbers = #tpu.dot_dimension_numbers<[1], [0], [0], [1], [0, 0, 1, 1], [], []>} : vector<8x8xf32>, vector<8x8xf32>, vector<8x8xf32> -> vector<8x8xf32>
    %166 = arith.addf %164, %165 : vector<8x8xf32>
    %167 = tpu.reciprocal %162 : vector<8x1xf32> -> vector<8x1xf32>
    %168 = vector.broadcast %167 : vector<8x1xf32> to vector<8x8xf32>
    %169 = arith.mulf %166, %168 : vector<8x8xf32>
    %170 = arith.index_cast %arg1 : i32 to index
    %171 = arith.index_cast %18 : i32 to index
    %c24_70 = arith.constant 24 : index
    %172 = vector.load %arg8[%170, %171, %c24_70] : memref<1x8x32xf32, #tpu.memory_space<vmem>>, vector<1x8x8xf32>
    %173 = vector.shape_cast %172 : vector<1x8x8xf32> to vector<8x8xf32>
    %174 = vector.shape_cast %169 : vector<8x8xf32> to vector<1x8x8xf32>
    tpu.vector_store %arg8[%170, %171, %c24_70], %174 {strides = array<i32>} : memref<1x8x32xf32, #tpu.memory_space<vmem>>, vector<1x8x8xf32>,
    %c1_i32_71 = arith.constant 1 : i32
    %c0_i32_72 = arith.constant 0 : i32
    %175 = arith.cmpi eq, %arg1, %c0_i32_72 : i32
    %176 = arith.extui %175 : i1 to i32
    %c0_i32_73 = arith.constant 0 : i32
    %177 = arith.cmpi ne, %176, %c0_i32_73 : i32
    scf.if %177 {
      %c0_74 = arith.constant 0 : index
      %c0_75 = arith.constant 0 : index
      %c0_76 = arith.constant 0 : index
      %178 = vector.load %arg8[%c0_74, %c0_75, %c0_76] : memref<1x8x32xf32, #tpu.memory_space<vmem>>, vector<1x8x32xf32>
      %179 = vector.shape_cast %178 : vector<1x8x32xf32> to vector<8x32xf32>
      %c0_77 = arith.constant 0 : index
      %c0_78 = arith.constant 0 : index
      %c0_79 = arith.constant 0 : index
      %180 = vector.load %arg6[%c0_77, %c0_78, %c0_79] : memref<1x32x32xf32, #tpu.memory_space<vmem>>, vector<1x32x32xf32>
      %181 = vector.shape_cast %180 : vector<1x32x32xf32> to vector<32x32xf32>
      %cst_80 = arith.constant dense<0.000000e+00> : vector<8x32xf32>
      %182 = tpu.matmul %179, %181, %cst_80 {dimension_numbers = #tpu.dot_dimension_numbers<[1], [0], [0], [1], [0, 0, 1, 1], [], []>} : vector<8x32xf32>, vector<32x32xf32>, vector<8x32xf32> -> vector<8x32xf32>
      %c0_81 = arith.constant 0 : index
      %c0_82 = arith.constant 0 : index
      %c0_83 = arith.constant 0 : index
      %183 = vector.load %arg7[%c0_81, %c0_82, %c0_83] : memref<1x8x32xf32, #tpu.memory_space<vmem>>, vector<1x8x32xf32>
      %184 = vector.shape_cast %183 : vector<1x8x32xf32> to vector<8x32xf32>
      %185 = vector.shape_cast %182 : vector<8x32xf32> to vector<1x8x32xf32>
      tpu.vector_store %arg7[%c0_81, %c0_82, %c0_83], %185 {strides = array<i32>} : memref<1x8x32xf32, #tpu.memory_space<vmem>>, vector<1x8x32xf32>,
    } else {
    }
    return
  }
  func.func @transform_0(%arg0: i32, %arg1: i32) -> (i32, i32, i32) {
    %c0_i32 = arith.constant 0 : i32
    %c0_i32_0 = arith.constant 0 : i32
    %c0_i32_1 = arith.constant 0 : i32
    return %arg0, %c0_i32, %c0_i32_0 : i32, i32, i32
  }
  func.func @transform_1(%arg0: i32, %arg1: i32) -> (i32, i32, i32) {
    %c0_i32 = arith.constant 0 : i32
    %c0_i32_0 = arith.constant 0 : i32
    %c0_i32_1 = arith.constant 0 : i32
    return %arg1, %c0_i32, %c0_i32_0 : i32, i32, i32
  }
  func.func @transform_2(%arg0: i32, %arg1: i32) -> (i32, i32, i32) {
    %c0_i32 = arith.constant 0 : i32
    %c0_i32_0 = arith.constant 0 : i32
    %c0_i32_1 = arith.constant 0 : i32
    return %arg1, %c0_i32, %c0_i32_0 : i32, i32, i32
  }
  func.func @transform_3(%arg0: i32, %arg1: i32) -> (i32, i32, i32) {
    %c0_i32 = arith.constant 0 : i32
    %c0_i32_0 = arith.constant 0 : i32
    %c0_i32_1 = arith.constant 0 : i32
    return %arg1, %c0_i32, %c0_i32_0 : i32, i32, i32
  }
  func.func @transform_4(%arg0: i32, %arg1: i32) -> (i32, i32, i32) {
    %c0_i32 = arith.constant 0 : i32
    %c0_i32_0 = arith.constant 0 : i32
    %c0_i32_1 = arith.constant 0 : i32
    %c0_i32_2 = arith.constant 0 : i32
    return %c0_i32, %c0_i32_0, %c0_i32_1 : i32, i32, i32
  }
  func.func @transform_5(%arg0: i32, %arg1: i32) -> (i32, i32, i32) {
    %c0_i32 = arith.constant 0 : i32
    %c0_i32_0 = arith.constant 0 : i32
    %c0_i32_1 = arith.constant 0 : i32
    return %arg0, %c0_i32, %c0_i32_0 : i32, i32, i32
  }
}

</mosaic_0001>

<bundles_post_ra>
// kernel: tpu_custom_call.1
= control target key start
LH: loop header
LB: loop body
LE: loop exit
PB: predicated region body
PF: predicated region fallthrough
CT: control target
= control target key end

     0   :  { %10 = vsyncpa [#allocation7], 0  ;;  %s2520_s0 = inlined_call_operand.hbm [shape: f32[2,8,32], index: 0, kind: input, shape index: {}]   ;;  %s2521_s1 = inlined_call_operand.hbm [shape: f32[1,32,32], index: 1, kind: input, shape index: {}]   ;;  %s2522_s2 = inlined_call_operand.hbm [shape: f32[1,32,32], index: 2, kind: input, shape index: {}]   ;;  %s2523_s3 = inlined_call_operand.hbm [shape: f32[1,32,32], index: 3, kind: input, shape index: {}]   ;;  %s2524_s4 = inlined_call_operand.hbm [shape: f32[1,32,32], index: 4, kind: input, shape index: {}]   ;;  %s2525_s5 = inlined_call_operand.hbm [shape: f32[2,8,32], index: 5, kind: output, shape index: {}]  }
   0x1   :  { %12 = vsyncpa [#allocation7 + $0x1], 0 }
   0x2   :  { %13 = vsyncpa [#allocation10], 0 }
   0x3   :  { %14 = vsyncpa [#allocation13], 0 }
   0x4   :  { %15 = vsyncpa [#allocation8], 0 }
   0x5   :  { %17 = vsyncpa [#allocation8 + $0x1], 0  ;;  %s2121_s18 = smov 0   ;;  %s2123_s19 = smov 0  }
   0x6   :  { %s2125_s20 = smov 0   ;;  %s2127_s21 = smov 0  }
   0x7   :  { %s2129_s22 = smov 0   ;;  %s2131_s23 = smov 0  }
   0x8 LB: > { %s1521_s24 = sadd.s32 4294967295, %s2072_s23   ;;  %p1523_p0 = scmp.ge.s32.totalorder %s2072_s23, 1  ;;  %s2072_s23 = sphi %s2131_s23, %s23_s23   ;;  %s2068_s22 = sphi %s2129_s22, %s2549_s22   ;;  %s2064_s21 = sphi %s2127_s21, %s2548_s21   ;;  %s2060_s20 = sphi %s2125_s20, %s2547_s20   ;;  %s2056_s19 = sphi %s2123_s19, %s2546_s19   ;;  %s2052_s18 = sphi %s2121_s18, %s2545_s18  }
   0x9   : > { %p2155_p1 = scmp.eq.s32.totalorder %s1521_s24, 0  ;;  %p191_p2 = scmp.lt.s32.totalorder %s2072_s23, 3 }
   0xa   : > { %s2074_s27 = smov [#allocation9]   ;;  %s2075_s30 = smov [#allocation12]  }
   0xb   : > { %s2530_s25 = scalar_select %p2155_p1, 1, 0 }
   0xc   : > { %p2160_p3 = pnand %p1523_p0, %p191_p2  ;;  %s206_s28 = sshll.u32 %s2074_s27, 4  ;;  %s2164_s28 = int_to_ptr.vmem [resolvable:$true] %s206_s28 }
   0xd   : > { %s238_s6 = sshll.u32 %s2075_s30, 4  ;;  %s2076_s7 = smov [#allocation11]   ;;  %s2175_s6 = int_to_ptr.vmem [resolvable:$true] %s238_s6 }
   0xe   : > { %s2531_s26 = scalar_select %p2160_p3, 1, 0 }
   0xf   : > { %p1722_p4 = pneg %p2160_p3  ;;  %s2177_s8 = sshll.u32 %s2076_s7, 4  ;;  %s223_s8 = int_to_ptr.vmem [resolvable:$true] %s2177_s8 }
  0x10   : > { %s1840_s11 = scalar_lea.hbm %s2521_s1, 512 }
  0x11   : > { %p2171_p6 = pnand %p1722_p4, %p2155_p1  ;;  %p1841_p7 = scmp.ne.s32.totalorder %s2521_s1, %s1840_s11 }
  0x12   : > { %p1847_p11 = scmp.lt.u32.totalorder %s1840_s11, %s2521_s1 }
  0x13   : > { %p2187_p8 = pneg %p2171_p6 }
  0x15   : > { %p1843_p9 = pnand %p2187_p8, %p1841_p7 }
  0x17   : > { %p1844_p10 = pneg %p1843_p9 }
  0x19   : > { %p1849_p12 = pnand %p1847_p11, %p1844_p10 }
  0x1b   : > { %1852 = shalt.err (!%p1849_p12)
}
  0x1c   : > { %s1853_s17 = scalar_lea.vmem %s2164_s28, 512  ;;  %p1861_p4 = scmp.lt.s32.totalorder %s2164_s28, %s2164_s28 }
  0x1d   : > { %p1854_p13 = scmp.ne.s32.totalorder %s2164_s28, %s1853_s17  ;;  %p1862_p5 = scmp.lt.s32.totalorder %s1853_s17, %s1853_s17 }
  0x1f   : > { %p1856_p0 = pnand %p1854_p13, %p2187_p8  ;;  %p1863_p7 = por %p1862_p5, %p1861_p4 }
  0x21   : > { %p1857_p2 = pneg %p1856_p0 }
  0x23   : > { %p1864_p9 = pnand %p1863_p7, %p1857_p2 }
  0x25   : > { %1867 = shalt.err (!%p1864_p9)
}
  0x26   : > { %s2077_s27 = smov 128   ;;  %s2078_s30 = smov 8  }
  0x27   : > { %1725 = dma.hbm_to_vmem [thread:$0]  (!%p2171_p6), %s2521_s1, 512, %s2164_s28, [#allocation10], %s2077_s27, %s2077_s27, %s2078_s30  }
  0x28   : > { %s1868_s12 = scalar_lea.hbm %s2523_s3, 512 }
  0x29   : > { %p1869_p5 = scmp.ne.s32.totalorder %s2523_s3, %s1868_s12  ;;  %p1875_p12 = scmp.lt.u32.totalorder %s1868_s12, %s2523_s3 }
  0x2b   : > { %p1871_p10 = pnand %p1869_p5, %p2187_p8 }
  0x2d   : > { %p1872_p11 = pneg %p1871_p10 }
  0x2f   : > { %p1877_p13 = pnand %p1875_p12, %p1872_p11 }
  0x31   : > { %1880 = shalt.err (!%p1877_p13)
}
  0x32   : > { %s1881_s28 = scalar_lea.vmem %s2175_s6, 512  ;;  %p1889_p7 = scmp.lt.s32.totalorder %s2175_s6, %s2175_s6 }
  0x33   : > { %p1882_p0 = scmp.ne.s32.totalorder %s2175_s6, %s1881_s28  ;;  %p1890_p9 = scmp.lt.s32.totalorder %s1881_s28, %s1881_s28 }
  0x35   : > { %p1884_p2 = pnand %p1882_p0, %p2187_p8  ;;  %p1891_p5 = por %p1890_p9, %p1889_p7 }
  0x37   : > { %p1885_p4 = pneg %p1884_p2 }
  0x39   : > { %p1892_p10 = pnand %p1891_p5, %p1885_p4 }
  0x3b   : > { %1895 = shalt.err (!%p1892_p10)
}
  0x3c   : > { %1731 = dma.hbm_to_vmem [thread:$0]  (!%p2171_p6), %s2523_s3, 512, %s2175_s6, [#allocation13], %s2077_s27, %s2077_s27, %s2078_s30  }
  0x3d   : > { %s1896_s12 = scalar_lea.hbm %s2522_s2, 512 }
  0x3e   : > { %p1897_p11 = scmp.ne.s32.totalorder %s2522_s2, %s1896_s12  ;;  %p1903_p0 = scmp.lt.u32.totalorder %s1896_s12, %s2522_s2 }
  0x40   : > { %p1899_p12 = pnand %p1897_p11, %p2187_p8 }
  0x42   : > { %p1900_p13 = pneg %p1899_p12 }
  0x44   : > { %p1905_p2 = pnand %p1903_p0, %p1900_p13 }
  0x46   : > { %1908 = shalt.err (!%p1905_p2)
}
  0x47   : > { %s1909_s28 = scalar_lea.vmem %s223_s8, 512  ;;  %p1917_p5 = scmp.lt.s32.totalorder %s223_s8, %s223_s8 }
  0x48   : > { %p1910_p4 = scmp.ne.s32.totalorder %s223_s8, %s1909_s28  ;;  %p1918_p10 = scmp.lt.s32.totalorder %s1909_s28, %s1909_s28 }
  0x4a   : > { %p1912_p7 = pnand %p1910_p4, %p2187_p8  ;;  %p1919_p3 = por %p1918_p10, %p1917_p5 }
  0x4c   : > { %p1913_p9 = pneg %p1912_p7 }
  0x4e   : > { %p1920_p1 = pnand %p1919_p3, %p1913_p9 }
  0x50   : > { %1923 = shalt.err (!%p1920_p1)
}
  0x51   : > { %1728 = dma.hbm_to_vmem [thread:$0]  (!%p2171_p6), %s2522_s2, 512, %s223_s8, [#allocation10], %s2077_s27, %s2077_s27, %s2078_s30  }
  0x52   : > { %s2079_s9 = smov [#allocation14]   ;;  %s1924_s13 = scalar_lea.hbm %s2524_s4, 512 }
  0x53   : > { %s251_s10 = sshll.u32 %s2079_s9, 4  ;;  %p1925_p1 = scmp.ne.s32.totalorder %s2524_s4, %s1924_s13  ;;  %s252_s10 = int_to_ptr.vmem [resolvable:$true] %s251_s10 }
  0x54   : > { %p1931_p12 = scmp.lt.u32.totalorder %s1924_s13, %s2524_s4 }
  0x55   : > { %p1927_p3 = pnand %p1925_p1, %p2187_p8 }
  0x57   : > { %p1928_p11 = pneg %p1927_p3 }
  0x59   : > { %p1933_p13 = pnand %p1931_p12, %p1928_p11 }
  0x5b   : > { %1936 = shalt.err (!%p1933_p13)
}
  0x5c   : > { %s1937_s8 = scalar_lea.vmem %s252_s10, 512  ;;  %p1945_p7 = scmp.lt.s32.totalorder %s252_s10, %s252_s10 }
  0x5d   : > { %p1938_p0 = scmp.ne.s32.totalorder %s252_s10, %s1937_s8  ;;  %p1946_p9 = scmp.lt.s32.totalorder %s1937_s8, %s1937_s8 }
  0x5f   : > { %p1940_p2 = pnand %p1938_p0, %p2187_p8  ;;  %p1947_p5 = por %p1946_p9, %p1945_p7 }
  0x61   : > { %p1941_p4 = pneg %p1940_p2 }
  0x63   : > { %p1948_p10 = pnand %p1947_p5, %p1941_p4 }
  0x65   : > { %1951 = shalt.err (!%p1948_p10)
}
  0x66   : > { %1734 = dma.hbm_to_vmem [thread:$0]  (!%p2171_p6), %s2524_s4, 512, %s252_s10, [#allocation13], %s2077_s27, %s2077_s27, %s2078_s30  }
  0x67   : > { %s1522_s29 = sadd.s32 4294967294, %s2072_s23   ;;  %s35_s14 = sadd.s32 1, %s2068_s22 }
  0x68   : > { %p37_p8 = scmp.ge.s32.totalorder %s35_s14, 2  ;;  %s42_s9 = sadd.s32 1, %s2060_s20 }
  0x69   : > { %p49_p1 = scmp.ne.s32.totalorder %s2060_s20, %s2056_s19  ;;  %p50_p3 = scmp.eq.s32.totalorder %s2072_s23, 0 }
  0x6a   : > { %s2551_s14 = smov (%p37_p8, %s35_s14), 0  ;;  %p55_p12 = scmp.ne.s32.totalorder %s2056_s19, %s2052_s18 }
  0x6b   : > { %p2288_p11 = por %p50_p3, %p49_p1  ;;  %s39_s27 = ssub.s32 %s2068_s22, %s2551_s14 }
  0x6c   : > { %p178_p6 = scmp.eq.s32.totalorder %s1521_s24, 1  ;;  %p40_p13 = scmp.eq.s32.totalorder %s39_s27, 0 }
  0x6d   : > { %p2535_p0 = scmp.ne.s32.totalorder %s2530_s25, 0  ;;  %p184_p7 = scmp.eq.s32.totalorder %s1522_s29, 1 }
  0x6e   : > { %p2304_p4 = por %p178_p6, %p49_p1  ;;  %p1747_p5 = scmp.lt.s32.totalorder %s2072_s23, 2 }
  0x6f   : > { %p2300_p2 = por %p2535_p0, %p55_p12  ;;  %p2311_p9 = por %p184_p7, %p55_p12 }
  0x70   : > { %s2537_s10 = scalar_select %p2304_p4, 1, 0 }
  0x71   : > { %s2309_s12 = scalar_select %p40_p13, %s2060_s20, %s42_s9  }
  0x72   : > { %s2538_s13 = scalar_select %p2311_p9, 1, 0 }
  0x73   : > { %s265_s15 = sand.u32 1, %s2060_s20   ;;  %s1530_s24 = sshll.u32 %s2068_s22, 7 }
  0x74   : > { %s1529_s16 = sshll.u32 %s265_s15, 3  ;;  %s2321_s8 = scalar_lea.hbm %s2520_s0, %s1530_s24 }
  0x75   : > { %s269_s6 = scalar_lea.vmem [#allocation6], %s1529_s16  ;;  %p2325_p10 = pnand %p1747_p5, %p2288_p11 }
  0x76   : > { %s276_s7 = sshll.u32 %s269_s6, 4  ;;  %s266_s9 = scalar_lea.sflag [#allocation7], %s265_s15  ;;  %s2329_s7 = int_to_ptr.vmem [resolvable:$true] %s276_s7 }
  0x77   : > { %s1952_s27 = scalar_lea.hbm %s2321_s8, 128  ;;  %p1954_p1 = pneg %p2325_p10 }
  0x78   : > { %p1953_p8 = scmp.ne.s32.totalorder %s2321_s8, %s1952_s27  ;;  %s1957_s11 = scalar_lea.hbm %s2520_s0, 256 }
  0x79   : > { %p1958_p11 = scmp.lt.u32.totalorder %s2321_s8, %s2520_s0  ;;  %p1959_p6 = scmp.lt.u32.totalorder %s1957_s11, %s1952_s27 }
  0x7a   : > { %p1955_p3 = pnand %p1954_p1, %p1953_p8  ;;  %p1961_p0 = scmp.lt.u32.totalorder %s1952_s27, %s2321_s8 }
  0x7b   : > { %p1960_p13 = por %p1959_p6, %p1958_p11 }
  0x7c   : > { %p1956_p12 = pneg %p1955_p3 }
  0x7d   : > { %p1962_p7 = por %p1961_p0, %p1960_p13 }
  0x7f   : > { %p1963_p5 = pnand %p1962_p7, %p1956_p12 }
  0x81   : > { %1966 = shalt.err (!%p1963_p5)
}
  0x82   : > { %s1967_s15 = scalar_lea.vmem %s2329_s7, 128  ;;  %s2080_s6 = smov [#allocation6]  }
  0x83   : > { %p1968_p8 = scmp.ne.s32.totalorder %s2329_s7, %s1967_s15  ;;  %s1972_s24 = sshll.u32 %s2080_s6, 4  ;;  %s1973_s24 = int_to_ptr.vmem [resolvable:$false] %s1972_s24 }
  0x84   : > { %s1974_s16 = scalar_lea.vmem %s1973_s24, 256  ;;  %p1975_p4 = scmp.lt.s32.totalorder %s2329_s7, %s1973_s24 }
  0x85   : > { %p1970_p3 = pnand %p1968_p8, %p1954_p1  ;;  %p1976_p11 = scmp.lt.s32.totalorder %s1974_s16, %s1967_s15 }
  0x87   : > { %p1971_p9 = pneg %p1970_p3  ;;  %p1977_p6 = por %p1976_p11, %p1975_p4 }
  0x89   : > { %p1978_p13 = pnand %p1977_p6, %p1971_p9 }
  0x8b   : > { %1981 = shalt.err (!%p1978_p13)
}
  0x8c   : > { %1738 = dma.hbm_to_vmem [thread:$0]  (!%p2325_p10), %s2321_s8, 128, %s2329_s7, %s266_s9  }
  0x8d   : > { %p2540_p12 = scmp.ne.s32.totalorder %s2531_s26, 0 }
  0x8e   : > { %s2359_s27 = sand.u32 (!%p2540_p12), 1, %s2056_s19  }
  0x8f   : > { %285 = sbr.rel (%p2540_p12) target bundleno = 1714 (0x6b2), region = 40  ;;  %s1532_s11 = sshll.u32 (!%p2540_p12), %s2359_s27, 3 }
  0x90   : > { %s288_s17 = scalar_lea.sflag (!%p2540_p12), [#allocation7], %s2359_s27  ;;  %s2365_s28 = scalar_lea.vmem (!%p2540_p12), [#allocation6], %s1532_s11 }
  0x96   : > { %2035 = dma.done.wait (%p2300_p2), %s288_s17, 128  }
  0x97   : > { %2037 = vsyncadd (%p2300_p2), %s288_s17, 4294967168  ;;  %p2541_p4 = scmp.ne.s32.totalorder %s2530_s25, 0 }
  0x99   : > { %2039 = dma.done.wait (%p2541_p4), [#allocation10], 1024  }
  0x9a   : > { %2041 = vsyncadd (%p2541_p4), [#allocation10], 4294966272 }
  0x9b   : > { %2043 = dma.done.wait (%p2541_p4), [#allocation13], 1024  }
  0x9c   : > { %2045 = vsyncadd (%p2541_p4), [#allocation13], 4294966272  ;;  %v2081_v0 = vmov 0.0|0.0   ;;  %vm2082_vm0 = vmmov 0   ;;  %v2083_v1 = vmov 0.0   ;;  %v335_v2 = vld [vmem:[#allocation9] sm:$0xff]  ;;  %v564_v34 = vlaneseq }
  0x9d   : > { %1678 = vmatprep.subr.bf16.mxu0 %v2081_v0  ;;  %1684 = vmatprep.subr.bf16.mxu1 %v2081_v0  ;;  %v336_v3 = vld [vmem:[#allocation9 + $0x8] sm:$0xff]  ;;  %v414_v4 = vld [vmem:[#allocation11] sm:$0xff]  ;;  %v337_v7 = vld [vmem:[#allocation9 + $0x10] sm:$0xff]  ;;  %vm339_vm1 = vcmask 261120   ;;  %vm572_vm2 = vcmask 64512   ;;  %s2084_s25 = smov 120  }
  0x9e   : > { %1602 = vmatprep.mubr.msk.f32.mxu0 %vm2082_vm0, %v2083_v1  ;;  %1613 = vmatprep.mubr.msk.f32.mxu1 %vm2082_vm0, %v2083_v1  ;;  %v1679_v5 = vpack.c.bf16 %v336_v3, %v335_v2  ;;  %v415_v6 = vld [vmem:[#allocation11 + $0x8] sm:$0xff]  ;;  %v338_v8 = vld [vmem:[#allocation9 + $0x18] sm:$0xff]  ;;  %v416_v10 = vld [vmem:[#allocation11 + $0x10] sm:$0xff]  ;;  %s2085_s26 = smov 112   ;;  %s2086_s30 = smov 104   ;;  %v565_v35 = vshrl.u32 %v564_v34, 7 }
  0x9f   : > { %v1685_v9 = vpack.c.bf16 %v415_v6, %v414_v4  ;;  %v417_v11 = vld [vmem:[#allocation11 + $0x18] sm:$0xff]  ;;  %v1682_v12 = vpack.c.bf16 %v338_v8, %v337_v7  ;;  %v489_v15 = vld [vmem:[#allocation12] sm:$0xff]  ;;  %v490_v16 = vld [vmem:[#allocation12 + $0x8] sm:$0xff]  ;;  %v567_v36 = vand.u32 127, %v564_v34  ;;  %s2087_s8 = smov 8   ;;  %s2088_s7 = smov 16  }
  0xa0   : > { %1680 = vmatpush3.bf16.msra.mxu0 %v1679_v5  ;;  %v1688_v13 = vpack.c.bf16 %v417_v11, %v416_v10  ;;  %v334_v14 = vld [vmem:[%s2365_s28] sm:$0xff]  ;;  %v1691_v18 = vpack.c.bf16 %v490_v16, %v489_v15  ;;  %s2089_s29 = smov 24   ;;  %vm928_vm4 = vcmask 130112   ;;  %vm1113_vm5 = vcmask 195712   ;;  %s1555_s9 = sshll.u32 %s2064_s21, 7 }
  0xa1   : > { %1686 = vmatpush3.bf16.msra.mxu1 %v1685_v9  ;;  %1681 = vmatprep.subr.bf16.mxu0 %v2081_v0  ;;  %v491_v17 = vld [vmem:[#allocation12 + $0x10] sm:$0xff]  ;;  %v492_v19 = vld [vmem:[#allocation12 + $0x18] sm:$0xff]  ;;  %vm568_vm3 = vcmp.ge.s32.totalorder %v565_v35, %v567_v36  ;;  %vm1298_vm6 = vcmask 261312   ;;  %s333_s15 = scalar_lea.vmem [#allocation15], %s1532_s11  ;;  %s2470_s17 = scalar_lea.hbm %s2525_s5, %s1555_s9 }
  0xa2   : > { %1687 = vmatprep.subr.bf16.mxu1 %v2081_v0  ;;  %v1694_v20 = vpack.c.bf16 %v492_v19, %v491_v17  ;;  %s1397_s6 = sshll.u32 %s333_s15, 4  ;;  %s1384_s28 = scalar_lea.sflag [#allocation8], %s2359_s27  ;;  %s2472_s6 = int_to_ptr.vmem [resolvable:$true] %s1397_s6 }
  0xa3   : > { %p2542_p9 = scmp.ne.s32.totalorder %s2537_s10, 0  ;;  %s2090_s21 = smov [#allocation15]  }
  0xa4   : > { %1683 = vmatpush3.bf16.msra.mxu0 %v1682_v12  ;;  %s1986_s11 = sshll.u32 %s2090_s21, 4  ;;  %s1987_s11 = int_to_ptr.vmem [resolvable:$false] %s1986_s11 }
  0xa5   : > { %1689 = vmatpush3.bf16.msra.mxu1 %v1688_v13  ;;  %1690 = vmatprep.subr.bf16.mxu0 %v2081_v0  ;;  %p1989_p0 = scmp.lt.s32.totalorder %s2472_s6, %s1987_s11 }
  0xa6   : > { %1627 = vmatprep.subr.mxu1 %v2083_v1 }
  0xa7   : > { %1603 = vmatmul.mubr.msk.f32.vlgmr.msra.gmra.mrb[0].mxu0 %vm339_vm1, %v334_v14 }
  0xa8   : > { %1614 = vmatmul.mubr.msk.f32.vlgmr.msra.gmra.mrb[0].mxu1 %vm339_vm1, %v334_v14  ;;  %1624 = vmatprep.mubr.msk.f32.mxu0 %vm2082_vm0, %v2083_v1 }
  0xa9   : > { %1629 = vmatprep.mubr.msk.f32.mxu1 %vm2082_vm0, %v2083_v1  ;;  %1692 = vmatpush3.bf16.msra.mxu0 %v1691_v18 }
  0xaa   : > { %1693 = vmatprep.subr.bf16.mxu0 %v2081_v0 }
  0xad   : > { %1695 = vmatpush3.bf16.msra.mxu0 %v1694_v20 }
  0xae   : > { %1647 = vmatprep.subr.mxu0 %v2083_v1 }
  0xb0   : > { %1625 = vmatmul.mubr.msk.f32.vlgmr.msra.gmra.mrb[2].mxu0 %vm339_vm1, %v334_v14 }
  0xb1   : > { %1649 = vmatprep.mubr.msk.f32.mxu0 %vm2082_vm0, %v2083_v1 }
 0x17a   : > { %v409_v21 = vpop.f32.mrb[0].mxu0 }
 0x17b   : > { %413 = vst.msk [vmem:[#allocation3] sm:$0xff] %vm339_vm1, %v409_v21  ;;  %v484_v22 = vpop.f32.mrb[0].mxu1  ;;  %v1604_v23 = vpop.f32.mrb[1].mxu0 }
 0x17c   : > { %488 = vst.msk [vmem:[#allocation4] sm:$0xff] %vm339_vm1, %v484_v22  ;;  %v1615_v24 = vpop.f32.mrb[1].mxu1 }
 0x182   : > { %v745_v25 = vld [vmem:[#allocation3] sm:$0xff] }
 0x183   : > { %v570_v26 = vld [vmem:[#allocation4] sm:$0xff]  ;;  %749 = vrot.lane.b32.xlu1 %v745_v25, %s2084_s25  ;;  %v559_v27 = vpop.f32.mrb[2].mxu0 }
 0x184   : > { %1628 = vmatpush3.xpose.msk.msra.mxu1 %vm572_vm2, %v570_v26  ;;  %563 = vst.msk [vmem:[#allocation5] sm:$0xff] %vm339_vm1, %v559_v27  ;;  %v1626_v28 = vpop.f32.mrb[3].mxu0 }
 0x185   : > { %1632 = vmatprep.subr.mxu1 %v2083_v1 }
 0x187   : > { %1630 = vmatmul.mubr.msk.f32.vlgmr.msra.gmra.mrb[2].mxu1 %vm572_vm2, %v745_v25  ;;  %937 = vrot.lane.b32.xlu1 %v570_v26, %s2085_s26 }
 0x188   : > { %1634 = vmatprep.mubr.msk.f32.mxu1 %vm2082_vm0, %v2083_v1 }
 0x18b   : > { %934 = vrot.lane.b32.xlu1 %v745_v25, %s2085_s26  ;;  %v571_v41 = vld [vmem:[#allocation5] sm:$0xff] }
 0x18c   : > { %1633 = vmatpush3.msra.mxu1 %v571_v41 }
 0x18d   : > { %1637 = vmatprep.subr.mxu1 %v2083_v1 }
 0x18f   : > { %1122 = vrot.lane.b32.xlu1 %v570_v26, %s2086_s30 }
 0x193   : > { %1119 = vrot.lane.b32.xlu1 %v745_v25, %s2086_s30 }
 0x1f5   : > { %v750_v29 = vpop.permute.xlu1 %749 }
 0x1f9   : > { %v938_v30 = vpop.permute.xlu1 %937 }
 0x1fa   : > { %1648 = vmatpush3.xpose.msk.msra.mxu0 %vm572_vm2, %v938_v30 }
 0x1fb   : > { %1657 = vmatprep.subr.mxu0 %v2083_v1 }
 0x1fd   : > { %v935_v31 = vpop.permute.xlu1 %934 }
 0x1fe   : > { %1650 = vmatmul.mubr.msk.f32.vlgmr.msra.gmra.mrb[4].mxu0 %vm572_vm2, %v935_v31 }
 0x1ff   : > { %1659 = vmatprep.mubr.msk.f32.mxu0 %vm2082_vm0, %v2083_v1 }
 0x201   : > { %v1123_v32 = vpop.permute.xlu1 %1122 }
 0x202   : > { %1658 = vmatpush3.xpose.msk.msra.mxu0 %vm572_vm2, %v1123_v32 }
 0x203   : > { %1696 = vmatprep.subr.bf16.mxu0 %v2081_v0 }
 0x205   : > { %v1120_v33 = vpop.permute.xlu1 %1119 }
 0x206   : > { %1660 = vmatmul.mubr.msk.f32.vlgmr.msra.gmra.mrb[6].mxu0 %vm572_vm2, %v1120_v33 }
 0x207   : > { %1675 = vmatprep.mubr.msk.f32.mxu0 %vm2082_vm0, %v2083_v1 }
 0x25a   : > { %v645_v37 = vpop.f32.mrb[2].mxu1 }
 0x25b   : > { %v649_v38 = vsel %vm568_vm3, %v645_v37, -1e+30  ;;  %v1631_v39 = vpop.f32.mrb[3].mxu1 }
 0x25c   : > { %v650_v40 = vsel %vm572_vm2, %v649_v38, -inf }
 0x25d   : > { %651 = vmax.xlane.f32.xlu0 %v650_v40 }
 0x273   : > { %752 = vrot.lane.b32.xlu0 %v570_v26, %s2084_s25 }
 0x2d1   : > { %v1009_v42 = vpop.f32.mrb[4].mxu0 }
 0x2d2   : > { %v1013_v43 = vsel %vm568_vm3, %v1009_v42, -1e+30  ;;  %v1651_v44 = vpop.f32.mrb[5].mxu0 }
 0x2d3   : > { %v1014_v45 = vsel %vm572_vm2, %v1013_v43, -inf }
 0x2d4   : > { %1015 = vmax.xlane.f32.xlu0 %v1014_v45 }
 0x2d9   : > { %v1194_v46 = vpop.f32.mrb[6].mxu0 }
 0x2da   : > { %v1198_v47 = vsel %vm568_vm3, %v1194_v46, -1e+30  ;;  %v1661_v48 = vpop.f32.mrb[7].mxu0 }
 0x2db   : > { %v1199_v49 = vsel %vm572_vm2, %v1198_v47, -inf  ;;  %v1305_v48 = vld [vmem:[#allocation14] sm:$0xff] }
 0x2dc   : > { %1200 = vmax.xlane.f32.xlu1 %v1199_v49  ;;  %v1306_v49 = vld [vmem:[#allocation14 + $0x8] sm:$0xff] }
 0x2ea   : > { %v652_v50 = vpop.xlane.xlu0 %651  ;;  %845 = vrot.lane.b32.xlu0 %v571_v41, %s2084_s25  ;;  %s1982_s25 = scalar_lea.vmem %s2472_s6, 128 }
 0x2eb   : > { %v653_v51 = vmax.f32 %v652_v50, -1e+30  ;;  %p1983_p2 = scmp.ne.s32.totalorder %s2472_s6, %s1982_s25 }
 0x2ed   : > { %v657_v52 = vsub.f32 %v649_v38, %v653_v51  ;;  %v654_v58 = vsub.f32 -1e+30, %v653_v51  ;;  %v1697_v51 = vpack.c.bf16 %v1306_v49, %v1305_v48  ;;  %p1984_p10 = pnand %p1983_p2, %p2542_p9 }
 0x2ee   : > { %v753_v55 = vpop.permute.xlu0 %752 }
 0x2ef   : > { %v658_v53 = vmul.f32 1.442695, %v657_v52  ;;  %v655_v59 = vmul.f32 1.442695, %v654_v58  ;;  %v1307_v52 = vld [vmem:[#allocation14 + $0x10] sm:$0xff]  ;;  %1698 = vmatpush3.bf16.msra.mxu0 %v1697_v51  ;;  %p1985_p1 = pneg %p1984_p10 }
 0x2f0   : > { %1699 = vmatprep.subr.bf16.mxu0 %v2081_v0 }
 0x2f1   : > { %1816 = vpow2.f32 %v658_v53  ;;  %v1308_v53 = vld [vmem:[#allocation14 + $0x18] sm:$0xff] }
 0x2f2   : > { %1818 = vpow2.f32 %v655_v59 }
 0x2fb   : > { %v1817_v54 = vpop.eup %1816 }
 0x2fc   : > { %1635 = vmatmul.mubr.msk.f32.vlgmr.msra.gmra.mrb[4].mxu1 %vm572_vm2, %v1817_v54  ;;  %v1819_v60 = vpop.eup %1818  ;;  %v661_v26 = vsel %vm572_vm2, %v1817_v54, 0.0 }
 0x2fd   : > { %1638 = vmatpush3.xpose.msk.msra.mxu1 %vm572_vm2, %v753_v55  ;;  %1639 = vmatprep.mubr.msk.f32.mxu1 %vm2082_vm0, %v2083_v1  ;;  %v660_v61 = vmul.f32 0.0, %v1819_v60 }
 0x2fe   : > { %1642 = vmatprep.subr.mxu1 %v2083_v1 }
 0x300   : > { %1640 = vmatmul.mubr.msk.f32.vlgmr.msra.gmra.mrb[6].mxu1 %vm572_vm2, %v750_v29 }
 0x301   : > { %1644 = vmatprep.mubr.msk.f32.mxu1 %vm2082_vm0, %v2083_v1 }
 0x361   : > { %v2441_v56 = vpop.xlane.xlu0 %1015 }
 0x362   : > { %v1017_v7 = vmax.f32 %v2441_v56, -1e+30 }
 0x364   : > { %v1021_v8 = vsub.f32 %v1013_v43, %v1017_v7  ;;  %v1018_v34 = vsub.f32 -1e+30, %v1017_v7 }
 0x365   : > { %v846_v57 = vpop.permute.xlu0 %845 }
 0x366   : > { %1643 = vmatpush3.msra.mxu1 %v846_v57  ;;  %v1022_v9 = vmul.f32 1.442695, %v1021_v8  ;;  %v1019_v36 = vmul.f32 1.442695, %v1018_v34  ;;  %v1700_v57 = vpack.c.bf16 %v1308_v53, %v1307_v52 }
 0x367   : > { %1652 = vmatprep.subr.mxu1 %v2083_v1 }
 0x368   : > { %1820 = vpow2.f32 %v1022_v9  ;;  %1701 = vmatpush3.bf16.msra.mxu0 %v1700_v57 }
 0x369   : > { %v1201_v12 = vpop.xlane.xlu1 %1200 }
 0x36a   : > { %v1202_v13 = vmax.f32 %v1201_v12, -1e+30 }
 0x36c   : > { %v1206_v16 = vsub.f32 %v1198_v47, %v1202_v13  ;;  %v1203_v37 = vsub.f32 -1e+30, %v1202_v13 }
 0x36e   : > { %v1207_v19 = vmul.f32 1.442695, %v1206_v16 }
 0x372   : > { %v1821_v10 = vpop.eup %1820 }
 0x373   : > { %v1025_v11 = vsel %vm572_vm2, %v1821_v10, 0.0 }
 0x3cf   : > { %v734_v62 = vpop.f32.mrb[4].mxu1 }
 0x3d0   : > { %v738_v63 = vadd.f32 %v734_v62, %v660_v61  ;;  %v1636_v2 = vpop.f32.mrb[5].mxu1 }
 0x3d3   : > { %v824_v3 = vpop.f32.mrb[6].mxu1 }
 0x3d4   : > { %v828_v4 = vsel %vm568_vm3, %v824_v3, -1e+30  ;;  %v1641_v5 = vpop.f32.mrb[7].mxu1 }
 0x3d5   : > { %v829_v6 = vsel %vm572_vm2, %v828_v4, -inf }
 0x3d6   : > { %830 = vmax.xlane.f32.xlu1 %v829_v6 }
 0x3e7   : > { %1030 = vrot.lane.b32.xlu1 %v571_v41, %s2085_s26  ;;  %s1988_s26 = scalar_lea.vmem %s1987_s11, 256 }
 0x3e8   : > { %p1990_p7 = scmp.lt.s32.totalorder %s1988_s26, %s1982_s25 }
 0x3ea   : > { %p1991_p5 = por %p1990_p7, %p1989_p0 }
 0x3eb   : > { %1215 = vrot.lane.b32.xlu1 %v571_v41, %s2086_s30 }
 0x3ec   : > { %p1992_p8 = pnand %p1991_p5, %p1985_p1 }
 0x40f   : > { %1026 = vadd.xlane.f32.xlu1 %v1025_v11 }
 0x463   : > { %v831_v14 = vpop.xlane.xlu1 %830 }
 0x464   : > { %v832_v15 = vmax.f32 %v831_v14, -1e+30 }
 0x466   : > { %v836_v17 = vsub.f32 %v828_v4, %v832_v15  ;;  %v833_v33 = vsub.f32 -1e+30, %v832_v15 }
 0x467   : > { %v1031_v20 = vpop.permute.xlu1 %1030 }
 0x468   : > { %v837_v18 = vmul.f32 1.442695, %v836_v17  ;;  %v834_v35 = vmul.f32 1.442695, %v833_v33 }
 0x46a   : > { %1822 = vpow2.f32 %v837_v18 }
 0x46b   : > { %1824 = vpow2.f32 %v1207_v19  ;;  %v1216_v24 = vpop.permute.xlu1 %1215 }
 0x474   : > { %v1823_v21 = vpop.eup %1822 }
 0x475   : > { %1645 = vmatmul.mubr.msk.f32.vlgmr.msra.gmra.mrb[8].mxu1 %vm572_vm2, %v1823_v21  ;;  %v840_v22 = vsel %vm572_vm2, %v1823_v21, 0.0  ;;  %v1825_v23 = vpop.eup %1824 }
 0x476   : > { %1653 = vmatpush3.msra.mxu1 %v1031_v20  ;;  %841 = vadd.xlane.f32.xlu0 %v840_v22  ;;  %v1210_v25 = vsel %vm572_vm2, %v1825_v23, 0.0 }
 0x477   : > { %1654 = vmatprep.mubr.msk.f32.mxu1 %vm2082_vm0, %v2083_v1  ;;  %1662 = vmatprep.subr.mxu1 %v2083_v1 }
 0x479   : > { %1655 = vmatmul.mubr.msk.f32.vlgmr.msra.gmra.mrb[10].mxu1 %vm572_vm2, %v1821_v10 }
 0x47a   : > { %1663 = vmatpush3.msra.mxu1 %v1216_v24  ;;  %1211 = vadd.xlane.f32.xlu0 %v1210_v25 }
 0x47b   : > { %1664 = vmatprep.mubr.msk.f32.mxu1 %vm2082_vm0, %v2083_v1  ;;  %v1204_v1 = vmul.f32 1.442695, %v1203_v37 }
 0x47d   : > { %1665 = vmatmul.mubr.msk.f32.vlgmr.msra.gmra.mrb[12].mxu1 %vm572_vm2, %v1825_v23 }
 0x47e   : > { %662 = vadd.xlane.f32.xlu0 %v661_v26 }
 0x49c   : > { %v1027_v42 = vpop.xlane.xlu1 %1026 }
 0x503   : > { %v842_v27 = vpop.xlane.xlu0 %841 }
 0x507   : > { %v1212_v28 = vpop.xlane.xlu0 %1211 }
 0x50b   : > { %v663_v29 = vpop.xlane.xlu0 %662 }
 0x50c   : > { %v664_v30 = vadd.f32 %v663_v29, %v660_v61 }
 0x50e   : > { %1826 = vrcp.f32 %v664_v30 }
 0x50f   : > { %1828 = vpow2.f32 %v834_v35 }
 0x510   : > { %1830 = vpow2.f32 %v1019_v36 }
 0x511   : > { %1832 = vpow2.f32 %v1204_v1 }
 0x518   : > { %v1827_v31 = vpop.eup %1826 }
 0x519   : > { %v740_v32 = vmul.f32 %v1827_v31, %v738_v63  ;;  %v1829_v38 = vpop.eup %1828 }
 0x51a   : > { %v839_v39 = vmul.f32 0.0, %v1829_v38  ;;  %v1831_v40 = vpop.eup %1830 }
 0x51b   : > { %744 = vst.msk [vmem:[#allocation2] sm:$0xff] %vm572_vm2, %v740_v32  ;;  %v1024_v43 = vmul.f32 0.0, %v1831_v40  ;;  %v1833_v44 = vpop.eup %1832 }
 0x51c   : > { %v843_v41 = vadd.f32 %v842_v27, %v839_v39  ;;  %v1209_v46 = vmul.f32 0.0, %v1833_v44 }
 0x51d   : > { %v1028_v45 = vadd.f32 %v1027_v42, %v1024_v43 }
 0x51e   : > { %1834 = vrcp.f32 %v843_v41  ;;  %v1213_v47 = vadd.f32 %v1212_v28, %v1209_v46 }
 0x51f   : > { %1836 = vrcp.f32 %v1028_v45 }
 0x520   : > { %1838 = vrcp.f32 %v1213_v47 }
 0x528   : > { %v1835_v56 = vpop.eup %1834 }
 0x529   : > { %v1837_v62 = vpop.eup %1836 }
 0x52a   : > { %v1839_v5 = vpop.eup %1838 }
 0x548   : > { %v917_v50 = vpop.f32.mrb[8].mxu1 }
 0x549   : > { %v921_v54 = vadd.f32 %v917_v50, %v839_v39  ;;  %v1646_v55 = vpop.f32.mrb[9].mxu1 }
 0x54b   : > { %v923_v58 = vmul.f32 %v1835_v56, %v921_v54 }
 0x54c   : > { %v1102_v59 = vpop.f32.mrb[10].mxu1 }
 0x54d   : > { %v1106_v60 = vadd.f32 %v1102_v59, %v1024_v43  ;;  %925 = vrot.lane.b32.xlu1 %v923_v58, %s2087_s8  ;;  %v1656_v61 = vpop.f32.mrb[11].mxu1 }
 0x54f   : > { %v1108_v63 = vmul.f32 %v1837_v62, %v1106_v60 }
 0x550   : > { %v1287_v2 = vpop.f32.mrb[12].mxu1 }
 0x551   : > { %v1291_v3 = vadd.f32 %v1287_v2, %v1209_v46  ;;  %v1666_v4 = vpop.f32.mrb[13].mxu1  ;;  %1110 = vrot.lane.b32.xlu0 %v1108_v63, %s2088_s7 }
 0x553   : > { %v1293_v6 = vmul.f32 %v1839_v5, %v1291_v3 }
 0x555   : > { %1295 = vrot.lane.b32.xlu1 %v1293_v6, %s2089_s29 }
 0x5bf   : > { %v926_v0 = vpop.permute.xlu1 %925 }
 0x5c0   : > { %929 = vst.msk [vmem:[#allocation2] sm:$0xff] %vm928_vm4, %v926_v0 }
 0x5c3   : > { %v1111_v7 = vpop.permute.xlu0 %1110 }
 0x5c4   : > { %1114 = vst.msk [vmem:[#allocation2] sm:$0xff] %vm1113_vm5, %v1111_v7 }
 0x5c7   : > { %v1296_v8 = vpop.permute.xlu1 %1295 }
 0x5c8   : > { %1299 = vst.msk [vmem:[#allocation2] sm:$0xff] %vm1298_vm6, %v1296_v8 }
 0x5cf   : > { %v1304_v9 = vld [vmem:[#allocation2] sm:$0xff] }
 0x5d0   : > { %1676 = vmatmul.mubr.msk.f32.vlgmr.msra.gmra.mrb[8].mxu0 %vm339_vm1, %v1304_v9 }
 0x6a3   : > { %v1378_v10 = vpop.f32.mrb[8].mxu0 }
 0x6a4   : > { %1382 = vst.msk [vmem:[%s333_s15] sm:$0xff] %vm339_vm1, %v1378_v10  ;;  %v1677_v11 = vpop.f32.mrb[9].mxu0 }
 0x6a5   : > { %1995 = shalt.err (!%p1992_p8)
}
 0x6a6   : > { %s1996_s27 = scalar_lea.hbm %s2470_s17, 128  ;;  %s2000_s7 = scalar_lea.hbm %s2525_s5, 256 }
 0x6a7   : > { %p1997_p3 = scmp.ne.s32.totalorder %s2470_s17, %s1996_s27  ;;  %p2001_p13 = scmp.lt.u32.totalorder %s2470_s17, %s2525_s5 }
 0x6a8   : > { %p2002_p12 = scmp.lt.u32.totalorder %s2000_s7, %s1996_s27  ;;  %p2004_p2 = scmp.lt.u32.totalorder %s1996_s27, %s2470_s17 }
 0x6a9   : > { %p1998_p11 = pnand %p1997_p3, %p2542_p9 }
 0x6aa   : > { %p2003_p4 = por %p2002_p12, %p2001_p13 }
 0x6ab   : > { %p1999_p6 = pneg %p1998_p11 }
 0x6ac   : > { %p2005_p10 = por %p2004_p2, %p2003_p4 }
 0x6ae   : > { %p2006_p1 = pnand %p2005_p10, %p1999_p6 }
 0x6b0   : > { %2009 = shalt.err (!%p2006_p1)
}
 0x6b1   : > { %1720 = dma.vmem_to_hbm [thread:$0]  (%p2542_p9), %s2472_s6, 128, %s2470_s17, %s1384_s28  }
 0x6b2 PF: > { %s1409_s15 = sand.u32 1, %s2052_s18   ;;  %p2543_p0 = scmp.ne.s32.totalorder %s2538_s13, 0 }
 0x6b3   : > { %p2544_p7 = scmp.ge.s32.totalorder %s2072_s23, 2  ;;  %s1410_s24 = scalar_lea.sflag [#allocation8], %s1409_s15 }
 0x6b5   : > { %p1740_p5 = pnand %p2544_p7, %p2543_p0 }
 0x6b7   : > { %2047 = dma.done.wait (!%p1740_p5), %s1410_s24, 128  }
 0x6b8   : > { %2049 = vsyncadd (!%p1740_p5), %s1410_s24, 4294967168  ;;  %s23_s23 = sadd.s32 1, %s2072_s23   ;;  %s2545_s18 = smov %s2056_s19 }
 0x6b9   : > { %p20_p8 = scmp.ge.s32.totalorder %s23_s23, 4   ;;  %s2546_s19 = smov %s2060_s20 }
 0x6ba   : > { %s2547_s20 = smov %s2309_s12  ;;  %s2548_s21 = smov %s2068_s22 }
 0x6bb   : > { %s2549_s22 = smov %s2551_s14  ;;  %22 = sbr.rel (!%p20_p8) target bundleno = 8 (0x8), region = 109 }
 0x6c2   :  { %1415 = vsyncpa [#allocation7], 1 }
 0x6c3   :  { %1417 = vsyncpa [#allocation7 + $0x1], 1 }
 0x6c4   :  { %1418 = vsyncpa [#allocation10], 1 }
 0x6c5   :  { %1419 = vsyncpa [#allocation13], 1 }
 0x6c6   :  { %1420 = vsyncpa [#allocation8], 1 }
 0x6c7   :  { %1422 = vsyncpa [#allocation8 + $0x1], 1 }

</bundles_post_ra>
